<compile_context>
chip_gen: v7x
topology: tpu7x:2x2x1
jax: 0.10.0
libtpu: 0.0.40
codegen_flags: <defaults>
</compile_context>

<pallas_src>
import jax
import jax.numpy as jnp
from jax.experimental import pallas as pl
from jax.experimental.pallas import tpu as pltpu

BN_EPS = 1e-3                      # nn.BatchNorm2d(eps=0.001)
_TM_CANDIDATES = (1024, 512, 256, 128, 64, 32, 16, 8)
_VMEM_LIMIT = 48 * 1024 * 1024     # > 16/32 MiB defaults, < v7x 64 MiB physical


def _choose_tm(m):
    for tm in _TM_CANDIDATES:
        if m % tm == 0:
            return tm
    return m                        # fallback: single block (still full-dim legal)


def _compiler_params():
    return pltpu.CompilerParams(
        dimension_semantics=("parallel",),
        vmem_limit_bytes=_VMEM_LIMIT,
    )


# ---------------------------------------------------------------------------
# Pallas kernels
# ---------------------------------------------------------------------------
def _matmul_bn_silu_kernel(x_ref, w_ref, s_ref, b_ref, o_ref):
    """(TM, K) @ (K, Cout) + folded BN + SiLU.  bf16 in, f32 accum/epilogue."""
    y = jnp.dot(x_ref[...], w_ref[...], preferred_element_type=jnp.float32)
    y = y * s_ref[...] + b_ref[...]
    y = y * jax.nn.sigmoid(y)
    o_ref[...] = y.astype(o_ref.dtype)


def _matmul_bn_silu_res_kernel(x_ref, w_ref, s_ref, b_ref, r_ref, o_ref):
    """Same as above plus residual add (Bottleneck shortcut)."""
    y = jnp.dot(x_ref[...], w_ref[...], preferred_element_type=jnp.float32)
    y = y * s_ref[...] + b_ref[...]
    y = y * jax.nn.sigmoid(y)
    o_ref[...] = (y + r_ref[...].astype(jnp.float32)).astype(o_ref.dtype)


def _cat_matmul_bn_silu_kernel(a_ref, b_ref, wa_ref, wb_ref, s_ref, c_ref, o_ref):
    """Fused concat + 1x1 conv:  cat(a, b) @ W  ==  a @ W_top + b @ W_bot."""
    y = jnp.dot(a_ref[...], wa_ref[...], preferred_element_type=jnp.float32)
    y = y + jnp.dot(b_ref[...], wb_ref[...], preferred_element_type=jnp.float32)
    y = y * s_ref[...] + c_ref[...]
    y = y * jax.nn.sigmoid(y)
    o_ref[...] = y.astype(o_ref.dtype)


# ---------------------------------------------------------------------------
# Wrappers (BN folding, im2col layout, tiling glue stay in plain JAX)
# ---------------------------------------------------------------------------
def _fold_bn(p):
    scale = p["gamma"] / jnp.sqrt(p["var"] + BN_EPS)
    bias = p["beta"] - p["mean"] * scale
    return scale, bias


def _matmul_bn_silu(x2d, w2d, scale, bias, residual=None, out_dtype=jnp.bfloat16):
    m, k = x2d.shape
    cout = w2d.shape[1]
    tm = _choose_tm(m)
    grid = (m // tm,)
    x_spec = pl.BlockSpec((tm, k), lambda i: (i, 0))
    w_spec = pl.BlockSpec((k, cout), lambda i: (0, 0))       # pinned weights
    v_spec = pl.BlockSpec((1, cout), lambda i: (0, 0))       # pinned scale/bias
    o_spec = pl.BlockSpec((tm, cout), lambda i: (i, 0))
    if residual is None:
        return pl.pallas_call(
            _matmul_bn_silu_kernel,
            out_shape=jax.ShapeDtypeStruct((m, cout), out_dtype),
            grid=grid,
            in_specs=[x_spec, w_spec, v_spec, v_spec],
            out_specs=o_spec,
            compiler_params=_compiler_params(),
        )(x2d, w2d, scale, bias)
    r_spec = pl.BlockSpec((tm, cout), lambda i: (i, 0))
    return pl.pallas_call(
        _matmul_bn_silu_res_kernel,
        out_shape=jax.ShapeDtypeStruct((m, cout), out_dtype),
        grid=grid,
        in_specs=[x_spec, w_spec, v_spec, v_spec, r_spec],
        out_specs=o_spec,
        compiler_params=_compiler_params(),
    )(x2d, w2d, scale, bias, residual)


def conv1x1_bn_silu(x, p, out_dtype=jnp.bfloat16):
    """x: (N, H, W, Cin) NHWC -> (N, H, W, Cout)."""
    n, h, w, cin = x.shape
    cout = p["w"].shape[0]
    w2d = jnp.transpose(p["w"][:, :, 0, 0], (1, 0)).astype(jnp.bfloat16)
    scale, bias = _fold_bn(p)
    xf = x.reshape(n * h * w, cin).astype(jnp.bfloat16)
    out = _matmul_bn_silu(xf, w2d, scale.reshape(1, cout), bias.reshape(1, cout),
                          None, out_dtype)
    return out.reshape(n, h, w, cout)


def conv3x3_bn_silu(x, p, residual=None, out_dtype=jnp.bfloat16):
    """3x3 conv, stride 1, pad 1, as a single K=9*Cin matmul per tile."""
    n, h, w, cin = x.shape
    cout = p["w"].shape[0]
    xp = jnp.pad(x.astype(jnp.bfloat16), ((0, 0), (1, 1), (1, 1), (0, 0)))
    # im2col laid out as (M, 9*Cin); tap order = (dy, dx, cin), dy/dx major.
    taps = jnp.concatenate(
        [xp[:, dy:dy + h, dx:dx + w, :].reshape(n * h * w, cin)
         for dy in range(3) for dx in range(3)],
        axis=-1,
    )
    # torch weight (Cout, Cin, 3, 3) -> (kh, kw, Cin, Cout) -> (9*Cin, Cout)
    w2d = jnp.transpose(p["w"], (2, 3, 1, 0)).reshape(9 * cin, cout).astype(jnp.bfloat16)
    scale, bias = _fold_bn(p)
    res2d = None
    if residual is not None:
        res2d = residual.reshape(n * h * w, cout).astype(jnp.bfloat16)
    out = _matmul_bn_silu(taps, w2d, scale.reshape(1, cout), bias.reshape(1, cout),
                          res2d, out_dtype)
    return out.reshape(n, h, w, cout)


def cat_conv1x1_bn_silu(y1, y2, p, out_dtype=jnp.float32):
    """cv3(cat(y1, y2)) fused: concat never materialised in HBM."""
    n, h, w, c = y1.shape
    cout = p["w"].shape[0]
    w2d = jnp.transpose(p["w"][:, :, 0, 0], (1, 0)).astype(jnp.bfloat16)  # (2c, cout)
    wa, wb = w2d[:c], w2d[c:]
    scale, bias = _fold_bn(p)
    a = y1.reshape(n * h * w, c).astype(jnp.bfloat16)
    b = y2.reshape(n * h * w, c).astype(jnp.bfloat16)
    m = n * h * w
    tm = _choose_tm(m)
    grid = (m // tm,)
    act_spec = pl.BlockSpec((tm, c), lambda i: (i, 0))
    w_spec = pl.BlockSpec((c, cout), lambda i: (0, 0))
    v_spec = pl.BlockSpec((1, cout), lambda i: (0, 0))
    o_spec = pl.BlockSpec((tm, cout), lambda i: (i, 0))
    out = pl.pallas_call(
        _cat_matmul_bn_silu_kernel,
        out_shape=jax.ShapeDtypeStruct((m, cout), out_dtype),
        grid=grid,
        in_specs=[act_spec, act_spec, w_spec, w_spec, v_spec, v_spec],
        out_specs=o_spec,
        compiler_params=_compiler_params(),
    )(a, b, wa, wb, scale.reshape(1, cout), bias.reshape(1, cout))
    return out.reshape(n, h, w, cout)


def c3_forward(x_nchw, params, shortcut=True):
    """C3.forward: cv3(cat(m(cv1(x)), cv2(x), dim=channel))."""
    x = jnp.transpose(x_nchw, (0, 2, 3, 1)).astype(jnp.bfloat16)   # NCHW -> NHWC
    y1 = conv1x1_bn_silu(x, params["cv1"])
    for bp in params["m"]:
        t = conv1x1_bn_silu(y1, bp["cv1"])              # Bottleneck.cv1 (1x1)
        res = y1 if shortcut else None                  # add = shortcut and c1 == c2
        y1 = conv3x3_bn_silu(t, bp["cv2"], residual=res)  # Bottleneck.cv2 (3x3) + add
    y2 = conv1x1_bn_silu(x, params["cv2"])
    out = cat_conv1x1_bn_silu(y1, y2, params["cv3"], out_dtype=jnp.float32)
    return jnp.transpose(out, (0, 3, 1, 2))             # back to NCHW


# ---------------------------------------------------------------------------
# Deterministic parameter construction (synthetic, matches module shapes)
# ---------------------------------------------------------------------------
def make_conv_params(key, c_in, c_out, k):
    kw, kg, kb, km, kv = jax.random.split(key, 5)
    return dict(
        w=jax.random.normal(kw, (c_out, c_in, k, k), jnp.float32) * 0.2,
        gamma=1.0 + 0.1 * jax.random.normal(kg, (c_out,), jnp.float32),
        beta=0.1 * jax.random.normal(kb, (c_out,), jnp.float32),
        mean=0.1 * jax.random.normal(km, (c_out,), jnp.float32),
        var=jax.random.uniform(kv, (c_out,), jnp.float32, minval=0.5, maxval=1.5),
    )


def make_c3_params(key, c1, c2, n=1, e=0.5):
    c_ = int(c2 * e)
    keys = jax.random.split(key, 3 + 2 * n)
    params = dict(
        cv1=make_conv_params(keys[0], c1, c_, 1),
        cv2=make_conv_params(keys[1], c1, c_, 1),
        cv3=make_conv_params(keys[2], 2 * c_, c2, 1),
        m=[],
    )
    for i in range(n):  # Bottleneck(c_, c_, e=1.0): cv1 1x1, cv2 3x3
        params["m"].append(dict(
            cv1=make_conv_params(keys[3 + 2 * i], c_, c_, 1),
            cv2=make_conv_params(keys[4 + 2 * i], c_, c_, 3),
        ))
    return params


# ---------------------------------------------------------------------------
# Pure-JAX f32 reference (for correctness check)
# ---------------------------------------------------------------------------
def _ref_conv_bn_silu(x, p, k):
    pad = k // 2
    y = jax.lax.conv_general_dilated(
        x, p["w"], (1, 1), [(pad, pad), (pad, pad)],
        dimension_numbers=("NHWC", "OIHW", "NHWC"))
    scale, bias = _fold_bn(p)
    y = y * scale + bias
    return y * jax.nn.sigmoid(y)


def _ref_c3(x_nchw, params, shortcut=True):
    x = jnp.transpose(x_nchw, (0, 2, 3, 1))
    y1 = _ref_conv_bn_silu(x, params["cv1"], 1)
    for bp in params["m"]:
        t = _ref_conv_bn_silu(y1, bp["cv1"], 1)
        t = _ref_conv_bn_silu(t, bp["cv2"], 3)
        y1 = y1 + t if shortcut else t
    y2 = _ref_conv_bn_silu(x, params["cv2"], 1)
    out = _ref_conv_bn_silu(jnp.concatenate([y1, y2], axis=-1), params["cv3"], 1)
    return jnp.transpose(out, (0, 3, 1, 2))


def _run_check(key, n, c1, c2, h, w, n_bottlenecks, shortcut):
    kx, kp = jax.random.split(key)
    x = jax.random.normal(kx, (n, c1, h, w), jnp.float32)   # NCHW, like torch
    params = make_c3_params(kp, c1, c2, n=n_bottlenecks, e=0.5)
    out = jax.block_until_ready(c3_forward(x, params, shortcut=shortcut))
    ref = jax.block_until_ready(_ref_c3(x, params, shortcut=shortcut))
    assert out.shape == (n, c2, h, w), out.shape
    # bf16 matmul inputs vs f32 reference -> loose-but-meaningful tolerance
    assert jnp.allclose(out, ref, rtol=5e-2, atol=5e-2), (
        float(jnp.max(jnp.abs(out - ref))))


# ---------------------------------------------------------------------------
if __name__ == "__main__":
    key = jax.random.PRNGKey(0)
    k1, k2 = jax.random.split(key)

    # Primary small config (batch=2, channels=4, spatial=16), shortcut path.
    _run_check(k1, n=2, c1=4, c2=4, h=16, w=16, n_bottlenecks=1, shortcut=True)

    # Second config exercising a multi-step M grid (576 rows -> 9 tiles of 64),
    # two bottlenecks and the no-residual kernel variant (shortcut=False).
    _run_check(k2, n=1, c1=8, c2=8, h=24, w=24, n_bottlenecks=2, shortcut=False)

    print("KERNEL_OK")
</pallas_src>

<mosaic_0001>
module attributes {stable_mosaic.version = 11 : i64} {
  func.func @_matmul_bn_silu_kernel(%arg0: i32, %arg1: memref<512x4xbf16, #tpu.memory_space<vmem>>, %arg2: memref<4x2xbf16, #tpu.memory_space<vmem>>, %arg3: memref<1x2xf32, #tpu.memory_space<vmem>>, %arg4: memref<1x2xf32, #tpu.memory_space<vmem>>, %arg5: memref<512x2xbf16, #tpu.memory_space<vmem>>) attributes {dimension_semantics = [#tpu.dimension_semantics<parallel>], iteration_bounds = array<i64: 1>, scalar_prefetch = 0 : i64, scratch_operands = 0 : i64, tpu.core_type = #tpu.core_type<tc>, window_params = [{transform_indices = @transform_0, window_bounds = array<i64: 512, 4>}, {pipeline_mode = #tpu.pipeline_mode<synchronous>, transform_indices = @transform_1, window_bounds = array<i64: 4, 2>}, {pipeline_mode = #tpu.pipeline_mode<synchronous>, transform_indices = @transform_2, window_bounds = array<i64: 1, 2>}, {pipeline_mode = #tpu.pipeline_mode<synchronous>, transform_indices = @transform_3, window_bounds = array<i64: 1, 2>}, {transform_indices = @transform_4, window_bounds = array<i64: 512, 2>}]} {
    %c0 = arith.constant 0 : index
    %c0_0 = arith.constant 0 : index
    %0 = vector.load %arg1[%c0, %c0_0] : memref<512x4xbf16, #tpu.memory_space<vmem>>, vector<512x4xbf16>
    %c0_1 = arith.constant 0 : index
    %c0_2 = arith.constant 0 : index
    %1 = vector.load %arg2[%c0_1, %c0_2] : memref<4x2xbf16, #tpu.memory_space<vmem>>, vector<4x2xbf16>
    %cst = arith.constant dense<0.000000e+00> : vector<512x2xf32>
    %2 = tpu.matmul %0, %1, %cst {dimension_numbers = #tpu.dot_dimension_numbers<[1], [0], [0], [1], [0, 0, 1, 1], [], []>} : vector<512x4xbf16>, vector<4x2xbf16>, vector<512x2xf32> -> vector<512x2xf32>
    %c0_3 = arith.constant 0 : index
    %c0_4 = arith.constant 0 : index
    %3 = vector.load %arg3[%c0_3, %c0_4] : memref<1x2xf32, #tpu.memory_space<vmem>>, vector<1x2xf32>
    %4 = vector.broadcast %3 : vector<1x2xf32> to vector<512x2xf32>
    %5 = arith.mulf %2, %4 : vector<512x2xf32>
    %c0_5 = arith.constant 0 : index
    %c0_6 = arith.constant 0 : index
    %6 = vector.load %arg4[%c0_5, %c0_6] : memref<1x2xf32, #tpu.memory_space<vmem>>, vector<1x2xf32>
    %7 = vector.broadcast %6 : vector<1x2xf32> to vector<512x2xf32>
    %8 = arith.addf %5, %7 : vector<512x2xf32>
    %9 = arith.negf %8 : vector<512x2xf32>
    %10 = math.exp %9 : vector<512x2xf32>
    %cst_7 = arith.constant 1.000000e+00 : f32
    %11 = vector.broadcast %cst_7 : f32 to vector<512x2xf32>
    %12 = arith.addf %11, %10 : vector<512x2xf32>
    %13 = arith.divf %11, %12 : vector<512x2xf32>
    %14 = arith.mulf %8, %13 : vector<512x2xf32>
    %15 = arith.truncf %14 : vector<512x2xf32> to vector<512x2xbf16>
    %c0_8 = arith.constant 0 : index
    %c0_9 = arith.constant 0 : index
    %16 = vector.load %arg5[%c0_8, %c0_9] : memref<512x2xbf16, #tpu.memory_space<vmem>>, vector<512x2xbf16>
    tpu.vector_store %arg5[%c0_8, %c0_9], %15 {strides = array<i32>} : memref<512x2xbf16, #tpu.memory_space<vmem>>, vector<512x2xbf16>,
    return
  }
  func.func @transform_0(%arg0: i32) -> (i32, i32) {
    %c0_i32 = arith.constant 0 : i32
    %c0_i32_0 = arith.constant 0 : i32
    return %arg0, %c0_i32 : i32, i32
  }
  func.func @transform_1(%arg0: i32) -> (i32, i32) {
    %c0_i32 = arith.constant 0 : i32
    %c0_i32_0 = arith.constant 0 : i32
    %c0_i32_1 = arith.constant 0 : i32
    return %c0_i32, %c0_i32_0 : i32, i32
  }
  func.func @transform_2(%arg0: i32) -> (i32, i32) {
    %c0_i32 = arith.constant 0 : i32
    %c0_i32_0 = arith.constant 0 : i32
    %c0_i32_1 = arith.constant 0 : i32
    return %c0_i32, %c0_i32_0 : i32, i32
  }
  func.func @transform_3(%arg0: i32) -> (i32, i32) {
    %c0_i32 = arith.constant 0 : i32
    %c0_i32_0 = arith.constant 0 : i32
    %c0_i32_1 = arith.constant 0 : i32
    return %c0_i32, %c0_i32_0 : i32, i32
  }
  func.func @transform_4(%arg0: i32) -> (i32, i32) {
    %c0_i32 = arith.constant 0 : i32
    %c0_i32_0 = arith.constant 0 : i32
    return %arg0, %c0_i32 : i32, i32
  }
}

</mosaic_0001>

<bundles_post_ra>
// kernel: tpu_custom_call.1
= control target key start
LH: loop header
LB: loop body
LE: loop exit
PB: predicated region body
PF: predicated region fallthrough
CT: control target
= control target key end

     0   :  { %vm340_vm0 = vcmask 1041408   ;;  %vm243_vm1 = vcmask 31744   ;;  %vm1479_vm2 = vcmask 11264   ;;  %s3153_s1 = inlined_call_operand.vmem [shape: bf16[4,2], index: 1, kind: input, shape index: {}]   ;;  %s3154_s0 = inlined_call_operand.vmem [shape: bf16[512,4], index: 0, kind: input, shape index: {}]   ;;  %s3155_s2 = inlined_call_operand.vmem [shape: f32[1,2], index: 2, kind: input, shape index: {}]   ;;  %s3156_s3 = inlined_call_operand.vmem [shape: f32[1,2], index: 3, kind: input, shape index: {}]   ;;  %s3157_s4 = inlined_call_operand.vmem [shape: bf16[512,2], index: 4, kind: output, shape index: {}]  }
   0x1   :  { %v82_v0 = vld [vmem:[%s3153_s1] sm:$0x3]  ;;  %v1911_v4 = vld [vmem:[%s3154_s0 + $0x8] sm:$0xff]   ;;  %v1913_v6 = vld [vmem:[%s3154_s0 + $0x10] sm:$0xff]  }
   0x2   :  { %1907 = vmatprep.subr.msk.bf16.mxu0 %vm340_vm0, %v82_v0  ;;  %1908 = vmatprep.subr.msk.bf16.mxu1 %vm340_vm0, %v82_v0  ;;  %v342_v1 = vsel %vm340_vm0, %v82_v0, 0  ;;  %v1909_v2 = vld [vmem:[%s3154_s0] sm:$0xff]   ;;  %v1912_v5 = vld [vmem:[%s3154_s0 + $0x88] sm:$0xff]   ;;  %v1914_v7 = vld [vmem:[%s3154_s0 + $0x90] sm:$0xff]  }
   0x3   :  { %1840 = vmatpush3.bf16.msra.mxu0 %v342_v1  ;;  %1906 = vmatpush3.bf16.msra.mxu1 %v342_v1  ;;  %v1910_v3 = vld [vmem:[%s3154_s0 + $0x80] sm:$0xff]   ;;  %v1915_v8 = vld [vmem:[%s3154_s0 + $0x18] sm:$0xff]   ;;  %v1919_v12 = vld [vmem:[%s3154_s0 + $0x28] sm:$0xff]  }
   0x4   :  { %1841 = vmatprep.mubr.msk.bf16.mxu0 %vm243_vm1, %v1909_v2  ;;  %1873 = vmatprep.mubr.msk.bf16.mxu1 %vm243_vm1, %v1910_v3  ;;  %v1916_v9 = vld [vmem:[%s3154_s0 + $0x98] sm:$0xff]   ;;  %v1917_v10 = vld [vmem:[%s3154_s0 + $0x20] sm:$0xff]   ;;  %v1920_v13 = vld [vmem:[%s3154_s0 + $0xa8] sm:$0xff]  }
   0x5   :  { %v1918_v11 = vld [vmem:[%s3154_s0 + $0xa0] sm:$0xff]   ;;  %v1921_v14 = vld [vmem:[%s3154_s0 + $0x30] sm:$0xff]   ;;  %v1923_v16 = vld [vmem:[%s3154_s0 + $0x38] sm:$0xff]  }
   0x6   :  { %1842 = vmatmul.mubr.msk.bf16.vlgmr.msra.gmra.mrb[0].mxu0 %vm243_vm1, %v1911_v4  ;;  %1874 = vmatmul.mubr.msk.bf16.vlgmr.msra.gmra.mrb[0].mxu1 %vm243_vm1, %v1912_v5  ;;  %v1922_v15 = vld [vmem:[%s3154_s0 + $0xb0] sm:$0xff]   ;;  %v1924_v17 = vld [vmem:[%s3154_s0 + $0xb8] sm:$0xff]   ;;  %v1925_v18 = vld [vmem:[%s3154_s0 + $0x40] sm:$0xff]  }
   0x7   :  { %1845 = vmatprep.mubr.msk.bf16.mxu0 %vm243_vm1, %v1913_v6  ;;  %1877 = vmatprep.mubr.msk.bf16.mxu1 %vm243_vm1, %v1914_v7  ;;  %v1926_v19 = vld [vmem:[%s3154_s0 + $0xc0] sm:$0xff]   ;;  %v1927_v20 = vld [vmem:[%s3154_s0 + $0x48] sm:$0xff]   ;;  %v1929_v22 = vld [vmem:[%s3154_s0 + $0x50] sm:$0xff]  }
   0x8   :  { %v1928_v21 = vld [vmem:[%s3154_s0 + $0xc8] sm:$0xff]   ;;  %v1930_v23 = vld [vmem:[%s3154_s0 + $0xd0] sm:$0xff]   ;;  %v1931_v24 = vld [vmem:[%s3154_s0 + $0x58] sm:$0xff]  }
   0x9   :  { %v1932_v25 = vld [vmem:[%s3154_s0 + $0xd8] sm:$0xff]   ;;  %v1933_v26 = vld [vmem:[%s3154_s0 + $0x60] sm:$0xff]   ;;  %v1935_v28 = vld [vmem:[%s3154_s0 + $0x68] sm:$0xff]  }
   0xa   :  { %v1934_v27 = vld [vmem:[%s3154_s0 + $0xe0] sm:$0xff]   ;;  %v1936_v29 = vld [vmem:[%s3154_s0 + $0xe8] sm:$0xff]   ;;  %v1937_v30 = vld [vmem:[%s3154_s0 + $0x70] sm:$0xff]  }
   0xb   :  { %v1938_v31 = vld [vmem:[%s3154_s0 + $0xf0] sm:$0xff]   ;;  %v1939_v32 = vld [vmem:[%s3154_s0 + $0x78] sm:$0xff]   ;;  %v2358_v34 = vld [vmem:[%s3155_s2] ss:$0 sm:$0xff] }
   0xc   :  { %v1940_v33 = vld [vmem:[%s3154_s0 + $0xf8] sm:$0xff]   ;;  %v2363_v36 = vld [vmem:[%s3156_s3] ss:$0 sm:$0xff] }
   0xe   :  { %1846 = vmatmul.mubr.msk.bf16.gmra.mrb[4].mxu0 %vm243_vm1, %v1915_v8  ;;  %1878 = vmatmul.mubr.msk.bf16.gmra.mrb[4].mxu1 %vm243_vm1, %v1916_v9 }
   0xf   :  { %1849 = vmatprep.mubr.msk.bf16.mxu0 %vm243_vm1, %v1917_v10  ;;  %1881 = vmatprep.mubr.msk.bf16.mxu1 %vm243_vm1, %v1918_v11 }
  0x16   :  { %1850 = vmatmul.mubr.msk.bf16.gmra.mrb[8].mxu0 %vm243_vm1, %v1919_v12  ;;  %1882 = vmatmul.mubr.msk.bf16.gmra.mrb[8].mxu1 %vm243_vm1, %v1920_v13 }
  0x17   :  { %1853 = vmatprep.mubr.msk.bf16.mxu0 %vm243_vm1, %v1921_v14  ;;  %1885 = vmatprep.mubr.msk.bf16.mxu1 %vm243_vm1, %v1922_v15 }
  0x1e   :  { %1854 = vmatmul.mubr.msk.bf16.gmra.mrb[12].mxu0 %vm243_vm1, %v1923_v16  ;;  %1886 = vmatmul.mubr.msk.bf16.gmra.mrb[12].mxu1 %vm243_vm1, %v1924_v17 }
  0x1f   :  { %1857 = vmatprep.mubr.msk.bf16.mxu0 %vm243_vm1, %v1925_v18  ;;  %1889 = vmatprep.mubr.msk.bf16.mxu1 %vm243_vm1, %v1926_v19 }
  0x26   :  { %1858 = vmatmul.mubr.msk.bf16.gmra.mrb[16].mxu0 %vm243_vm1, %v1927_v20  ;;  %1890 = vmatmul.mubr.msk.bf16.gmra.mrb[16].mxu1 %vm243_vm1, %v1928_v21 }
  0x27   :  { %1861 = vmatprep.mubr.msk.bf16.mxu0 %vm243_vm1, %v1929_v22  ;;  %1893 = vmatprep.mubr.msk.bf16.mxu1 %vm243_vm1, %v1930_v23 }
  0x2e   :  { %1862 = vmatmul.mubr.msk.bf16.gmra.mrb[20].mxu0 %vm243_vm1, %v1931_v24  ;;  %1894 = vmatmul.mubr.msk.bf16.gmra.mrb[20].mxu1 %vm243_vm1, %v1932_v25 }
  0x2f   :  { %1865 = vmatprep.mubr.msk.bf16.mxu0 %vm243_vm1, %v1933_v26  ;;  %1897 = vmatprep.mubr.msk.bf16.mxu1 %vm243_vm1, %v1934_v27 }
  0x36   :  { %1866 = vmatmul.mubr.msk.bf16.gmra.mrb[24].mxu0 %vm243_vm1, %v1935_v28  ;;  %1898 = vmatmul.mubr.msk.bf16.gmra.mrb[24].mxu1 %vm243_vm1, %v1936_v29 }
  0x37   :  { %1869 = vmatprep.mubr.msk.bf16.mxu0 %vm243_vm1, %v1937_v30  ;;  %1901 = vmatprep.mubr.msk.bf16.mxu1 %vm243_vm1, %v1938_v31 }
  0x3e   :  { %1870 = vmatmul.mubr.msk.bf16.gmra.mrb[28].mxu0 %vm243_vm1, %v1939_v32  ;;  %1902 = vmatmul.mubr.msk.bf16.gmra.mrb[28].mxu1 %vm243_vm1, %v1940_v33 }
  0xd9   :  { %v1843_v35 = vpop.f32.mrb[0].mxu0  ;;  %v1875_v38 = vpop.f32.mrb[0].mxu1 }
  0xda   :  { %v642_v37 = vmul.f32 %v1843_v35, %v2358_v34  ;;  %v378_v39 = vpop.f32.mrb[1].mxu0  ;;  %v674_v40 = vmul.f32 %v1875_v38, %v2358_v34  ;;  %v506_v42 = vpop.f32.mrb[1].mxu1 }
  0xdb   :  { %v640_v41 = vmul.f32 %v2358_v34, %v378_v39  ;;  %v1844_v43 = vpop.f32.mrb[2].mxu0  ;;  %v672_v45 = vmul.f32 %v2358_v34, %v506_v42  ;;  %v1876_v47 = vpop.f32.mrb[2].mxu1 }
  0xdc   :  { %v2369_v44 = vadd.f32 %v2363_v36, %v642_v37  ;;  %v643_v46 = vmul.f32 %v1844_v43, %v2358_v34  ;;  %v381_v48 = vpop.f32.mrb[3].mxu0  ;;  %v2374_v49 = vadd.f32 %v2363_v36, %v674_v40  ;;  %v675_v51 = vmul.f32 %v1876_v47, %v2358_v34  ;;  %v509_v53 = vpop.f32.mrb[3].mxu1 }
  0xdd   :  { %v2377_v50 = vadd.f32 %v2363_v36, %v640_v41  ;;  %v641_v52 = vmul.f32 %v2358_v34, %v381_v48  ;;  %v2383_v55 = vadd.f32 %v2363_v36, %v672_v45  ;;  %v673_v57 = vmul.f32 %v2358_v34, %v509_v53 }
  0xde   :  { %v1616_v54 = vmul.f32 -1.442695, %v2369_v44  ;;  %v2386_v56 = vadd.f32 %v2363_v36, %v643_v46  ;;  %v1648_v58 = vmul.f32 -1.442695, %v2374_v49  ;;  %v2392_v60 = vadd.f32 %v2363_v36, %v675_v51 }
  0xdf   :  { %v1614_v59 = vmul.f32 -1.442695, %v2377_v50  ;;  %v2395_v61 = vadd.f32 %v2363_v36, %v641_v52  ;;  %v1646_v62 = vmul.f32 -1.442695, %v2383_v55  ;;  %v2400_v0 = vadd.f32 %v2363_v36, %v673_v57 }
  0xe0   :  { %1941 = vpow2.f32 %v1616_v54  ;;  %v1617_v63 = vmul.f32 -1.442695, %v2386_v56  ;;  %v1649_v1 = vmul.f32 -1.442695, %v2392_v60 }
  0xe1   :  { %1943 = vpow2.f32 %v1648_v58  ;;  %v1847_v2 = vpop.f32.mrb[4].mxu0  ;;  %v1615_v3 = vmul.f32 -1.442695, %v2395_v61  ;;  %v1879_v5 = vpop.f32.mrb[4].mxu1  ;;  %v1647_v7 = vmul.f32 -1.442695, %v2400_v0 }
  0xe2   :  { %1945 = vpow2.f32 %v1614_v59  ;;  %v646_v4 = vmul.f32 %v1847_v2, %v2358_v34  ;;  %v394_v6 = vpop.f32.mrb[5].mxu0  ;;  %v678_v8 = vmul.f32 %v1879_v5, %v2358_v34  ;;  %v522_v10 = vpop.f32.mrb[5].mxu1 }
  0xe3   :  { %1947 = vpow2.f32 %v1646_v62  ;;  %v644_v9 = vmul.f32 %v2358_v34, %v394_v6  ;;  %v1848_v11 = vpop.f32.mrb[6].mxu0  ;;  %v676_v13 = vmul.f32 %v2358_v34, %v522_v10  ;;  %v1880_v15 = vpop.f32.mrb[6].mxu1 }
  0xe4   :  { %1949 = vpow2.f32 %v1617_v63  ;;  %v2409_v12 = vadd.f32 %v2363_v36, %v646_v4  ;;  %v647_v14 = vmul.f32 %v1848_v11, %v2358_v34  ;;  %v397_v16 = vpop.f32.mrb[7].mxu0  ;;  %v2414_v17 = vadd.f32 %v2363_v36, %v678_v8  ;;  %v525_v20 = vpop.f32.mrb[7].mxu1 }
  0xe5   :  { %1951 = vpow2.f32 %v1649_v1  ;;  %v2417_v18 = vadd.f32 %v2363_v36, %v644_v9  ;;  %v679_v19 = vmul.f32 %v1880_v15, %v2358_v34  ;;  %v2422_v22 = vadd.f32 %v2363_v36, %v676_v13 }
  0xe6   :  { %1953 = vpow2.f32 %v1615_v3  ;;  %v1620_v21 = vmul.f32 -1.442695, %v2409_v12  ;;  %v2425_v23 = vadd.f32 %v2363_v36, %v647_v14  ;;  %v1652_v24 = vmul.f32 -1.442695, %v2414_v17 }
  0xe7   :  { %1955 = vpow2.f32 %v1647_v7  ;;  %v1618_v25 = vmul.f32 -1.442695, %v2417_v18  ;;  %v1650_v26 = vmul.f32 -1.442695, %v2422_v22  ;;  %v2432_v28 = vadd.f32 %v2363_v36, %v679_v19 }
  0xe8   :  { %1957 = vpow2.f32 %v1620_v21  ;;  %v1621_v27 = vmul.f32 -1.442695, %v2425_v23  ;;  %v645_v29 = vmul.f32 %v2358_v34, %v397_v16  ;;  %v677_v32 = vmul.f32 %v2358_v34, %v525_v20 }
  0xe9   :  { %1959 = vpow2.f32 %v1652_v24  ;;  %v1851_v30 = vpop.f32.mrb[8].mxu0  ;;  %v1883_v33 = vpop.f32.mrb[8].mxu1  ;;  %v2439_v52 = vmul.f32 -1.442695, %v2432_v28 }
  0xea   :  { %v1942_v31 = vpop.eup %1941  ;;  %1961 = vpow2.f32 %v1618_v25  ;;  %v410_v35 = vpop.f32.mrb[9].mxu0  ;;  %v650_v39 = vmul.f32 %v1851_v30, %v2358_v34  ;;  %v682_v45 = vmul.f32 %v1883_v33, %v2358_v34  ;;  %v2442_v53 = vadd.f32 %v2363_v36, %v645_v29 }
  0xeb   :  { %v1944_v37 = vpop.eup %1943  ;;  %v969_v38 = vadd.f32 1.0, %v1942_v31  ;;  %1963 = vpow2.f32 %v1650_v26  ;;  %v538_v40 = vpop.f32.mrb[9].mxu1  ;;  %v2445_v59 = vadd.f32 %v2363_v36, %v677_v32  ;;  %v648_v62 = vmul.f32 %v2358_v34, %v410_v35 }
  0xec   :  { %v1852_v41 = vpop.f32.mrb[10].mxu0  ;;  %v1946_v42 = vpop.eup %1945  ;;  %v1001_v43 = vadd.f32 1.0, %v1944_v37  ;;  %1965 = vpow2.f32 %v1621_v27  ;;  %v2449_v2 = vadd.f32 %v2363_v36, %v650_v39  ;;  %v680_v3 = vmul.f32 %v2358_v34, %v538_v40 }
  0xed   :  { %v1884_v46 = vpop.f32.mrb[10].mxu1  ;;  %v413_v47 = vpop.f32.mrb[11].mxu0  ;;  %1967 = vrcp.f32 %v969_v38  ;;  %v967_v51 = vadd.f32 1.0, %v1946_v42  ;;  %v2453_v6 = vadd.f32 %v2363_v36, %v682_v45  ;;  %v651_v7 = vmul.f32 %v1852_v41, %v2358_v34 }
  0xee   :  { %v1948_v48 = vpop.eup %1947  ;;  %v541_v54 = vpop.f32.mrb[11].mxu1  ;;  %1969 = vrcp.f32 %v1001_v43  ;;  %v1619_v10 = vmul.f32 -1.442695, %v2442_v53  ;;  %v683_v11 = vmul.f32 %v1884_v46, %v2358_v34  ;;  %v2459_v16 = vmul.f32 -1.442695, %v2445_v59 }
  0xef   :  { %v1950_v57 = vpop.eup %1949  ;;  %v999_v58 = vadd.f32 1.0, %v1948_v48  ;;  %1971 = vrcp.f32 %v967_v51  ;;  %v2462_v19 = vadd.f32 %v2363_v36, %v648_v62  ;;  %v2467_v26 = vmul.f32 -1.442695, %v2449_v2 }
  0xf0   :  { %v1952_v63 = vpop.eup %1951  ;;  %v970_v1 = vadd.f32 1.0, %v1950_v57  ;;  %v2470_v27 = vadd.f32 %v2363_v36, %v680_v3  ;;  %v2477_v33 = vmul.f32 -1.442695, %v2453_v6  ;;  %v2480_v35 = vadd.f32 %v2363_v36, %v651_v7 }
  0xf1   :  { %v1954_v4 = vpop.eup %1953  ;;  %1973 = vrcp.f32 %v999_v58  ;;  %v1002_v5 = vadd.f32 1.0, %v1952_v63  ;;  %v1855_v13 = vpop.f32.mrb[12].mxu0  ;;  %v2487_v41 = vadd.f32 %v2363_v36, %v683_v11  ;;  %v649_v42 = vmul.f32 %v2358_v34, %v413_v47 }
  0xf2   :  { %v1956_v8 = vpop.eup %1955  ;;  %1975 = vrcp.f32 %v970_v1  ;;  %v968_v9 = vadd.f32 1.0, %v1954_v4  ;;  %v1887_v20 = vpop.f32.mrb[12].mxu1  ;;  %v1622_v48 = vmul.f32 -1.442695, %v2462_v19  ;;  %v681_v51 = vmul.f32 %v2358_v34, %v541_v54 }
  0xf3   :  { %v1958_v14 = vpop.eup %1957  ;;  %1977 = vrcp.f32 %v1002_v5  ;;  %v1000_v15 = vadd.f32 1.0, %v1956_v8  ;;  %v2464_v21 = vpop.f32.mrb[13].mxu0  ;;  %v1654_v62 = vmul.f32 -1.442695, %v2470_v27  ;;  %v654_v63 = vmul.f32 %v1855_v13, %v2358_v34 }
  0xf4   :  { %v1960_v24 = vpop.eup %1959  ;;  %1979 = vrcp.f32 %v968_v9  ;;  %v973_v25 = vadd.f32 1.0, %v1958_v14  ;;  %v2472_v29 = vpop.f32.mrb[13].mxu1  ;;  %v1625_v47 = vmul.f32 -1.442695, %v2480_v35  ;;  %v686_v4 = vmul.f32 %v1887_v20, %v2358_v34 }
  0xf5   :  { %v2474_v30 = vpop.f32.mrb[14].mxu0  ;;  %v1962_v31 = vpop.eup %1961  ;;  %1981 = vrcp.f32 %v1000_v15  ;;  %v1005_v32 = vadd.f32 1.0, %v1960_v24  ;;  %v1657_v54 = vmul.f32 -1.442695, %v2487_v41  ;;  %v2502_v8 = vadd.f32 %v2363_v36, %v649_v42 }
  0xf6   :  { %v2482_v37 = vpop.f32.mrb[14].mxu1  ;;  %v2484_v38 = vpop.f32.mrb[15].mxu0  ;;  %1983 = vrcp.f32 %v973_v25  ;;  %v971_v40 = vadd.f32 1.0, %v1962_v31  ;;  %v2509_v14 = vadd.f32 %v2363_v36, %v681_v51  ;;  %v2517_v31 = vadd.f32 %v2363_v36, %v654_v63 }
  0xf7   :  { %v1964_v39 = vpop.eup %1963  ;;  %v2490_v43 = vpop.f32.mrb[15].mxu1  ;;  %1985 = vrcp.f32 %v1005_v32 }
  0xf8   :  { %v1966_v45 = vpop.eup %1965  ;;  %v1003_v46 = vadd.f32 1.0, %v1964_v39  ;;  %1987 = vrcp.f32 %v971_v40 }
  0xf9   :  { %v1968_v57 = vpop.eup %1967  ;;  %v974_v58 = vadd.f32 1.0, %v1966_v45  ;;  %v2504_v9 = vpop.f32.mrb[16].mxu0 }
  0xfa   :  { %v1970_v1 = vpop.eup %1969  ;;  %v1161_v3 = vmul.f32 %v1968_v57, %v2369_v44  ;;  %1989 = vrcp.f32 %v1003_v46  ;;  %v2511_v15 = vpop.f32.mrb[16].mxu1 }
  0xfb   :  { %v1972_v5 = vpop.eup %1971  ;;  %v1193_v7 = vmul.f32 %v1970_v1, %v2374_v49  ;;  %1991 = vrcp.f32 %v974_v58  ;;  %v2513_v49 = vpop.f32.mrb[17].mxu0  ;;  %v1655_v1 = vmul.f32 -1.442695, %v2509_v14 }
  0xfc   :  { %v1974_v11 = vpop.eup %1973  ;;  %v1744_v13 = vpack.c.bf16 %v1161_v3, %v1161_v3  ;;  %v1159_v44 = vmul.f32 %v1972_v5, %v2377_v50  ;;  %1993 = vpow2.f32 %v2439_v52  ;;  %v2519_v32 = vpop.f32.mrb[17].mxu1 }
  0xfd   :  { %v1976_v20 = vpop.eup %1975  ;;  %v1776_v24 = vpack.c.bf16 %v1193_v7, %v1193_v7  ;;  %v1191_v25 = vmul.f32 %v1974_v11, %v2383_v55  ;;  %1995 = vpow2.f32 %v1619_v10  ;;  %v2521_v50 = vpop.f32.mrb[18].mxu0  ;;  %v2530_v55 = vadd.f32 %v2363_v36, %v686_v4 }
  0xfe   :  { %v1978_v52 = vpop.eup %1977  ;;  %1482 = vst.msk [vmem:[%s3157_s4 + $0x8] sm:$0xf] %vm1479_vm2, %v1744_v13  ;;  %v1742_v39 = vpack.c.bf16 %v1159_v44, %v1159_v44  ;;  %v1162_v40 = vmul.f32 %v1976_v20, %v2386_v56  ;;  %1997 = vpow2.f32 %v2459_v16  ;;  %v2532_v10 = vpop.f32.mrb[18].mxu1  ;;  %v1623_v56 = vmul.f32 -1.442695, %v2502_v8 }
  0xff   :  { %v2534_v42 = vpop.f32.mrb[19].mxu0  ;;  %v1980_v45 = vpop.eup %1979  ;;  %1514 = vst.msk [vmem:[%s3157_s4 + $0x88] sm:$0xf] %vm1479_vm2, %v1776_v24  ;;  %v1774_v46 = vpack.c.bf16 %v1191_v25, %v1191_v25  ;;  %v1194_v51 = vmul.f32 %v1978_v52, %v2392_v60  ;;  %1999 = vpow2.f32 %v2467_v26  ;;  %v1628_v4 = vmul.f32 -1.442695, %v2517_v31 }
 0x100   :  { %v2543_v16 = vpop.f32.mrb[19].mxu1  ;;  %v1982_v57 = vpop.eup %1981  ;;  %1480 = vst.msk [vmem:[%s3157_s4] sm:$0xf] %vm1479_vm2, %v1742_v39  ;;  %v1745_v58 = vpack.c.bf16 %v1162_v40, %v1162_v40  ;;  %v1160_v63 = vmul.f32 %v1980_v45, %v2395_v61  ;;  %2001 = vpow2.f32 %v2477_v33  ;;  %v1660_v7 = vmul.f32 -1.442695, %v2530_v55 }
 0x101   :  { %v1984_v60 = vpop.eup %1983  ;;  %1512 = vst.msk [vmem:[%s3157_s4 + $0x80] sm:$0xf] %vm1479_vm2, %v1774_v46  ;;  %v1777_v26 = vpack.c.bf16 %v1194_v51, %v1194_v51  ;;  %v1192_v3 = vmul.f32 %v1982_v57, %v2400_v0  ;;  %2003 = vpow2.f32 %v1622_v48  ;;  %v652_v13 = vmul.f32 %v2358_v34, %v2464_v21  ;;  %v2571_v44 = vpop.f32.mrb[20].mxu0 }
 0x102   :  { %v1986_v5 = vpop.eup %1985  ;;  %1483 = vst.msk [vmem:[%s3157_s4 + $0xc] sm:$0xf] %vm1479_vm2, %v1745_v58  ;;  %v1743_v61 = vpack.c.bf16 %v1160_v63, %v1160_v63  ;;  %v1165_v33 = vmul.f32 %v1984_v60, %v2409_v12  ;;  %2005 = vpow2.f32 %v1654_v62  ;;  %v684_v24 = vmul.f32 %v2358_v34, %v2472_v29 }
 0x103   :  { %v1988_v11 = vpop.eup %1987  ;;  %1515 = vst.msk [vmem:[%s3157_s4 + $0x8c] sm:$0xf] %vm1479_vm2, %v1777_v26  ;;  %v1775_v0 = vpack.c.bf16 %v1192_v3, %v1192_v3  ;;  %v1197_v48 = vmul.f32 %v1986_v5, %v2414_v17  ;;  %2007 = vpow2.f32 %v1625_v47  ;;  %v2580_v17 = vpop.f32.mrb[20].mxu1  ;;  %v2611_v58 = vadd.f32 %v2363_v36, %v652_v13 }
 0x104   :  { %v1990_v20 = vpop.eup %1989  ;;  %1481 = vst.msk [vmem:[%s3157_s4 + $0x4] sm:$0xf] %vm1479_vm2, %v1743_v61  ;;  %v1748_v12 = vpack.c.bf16 %v1165_v33, %v1165_v33  ;;  %v1163_v62 = vmul.f32 %v1988_v11, %v2417_v18  ;;  %2009 = vpow2.f32 %v1657_v54  ;;  %v2582_v47 = vpop.f32.mrb[21].mxu0  ;;  %v655_v18 = vmul.f32 %v2474_v30, %v2358_v34 }
 0x105   :  { %v1992_v21 = vpop.eup %1991  ;;  %1513 = vst.msk [vmem:[%s3157_s4 + $0x84] sm:$0xf] %vm1479_vm2, %v1775_v0  ;;  %v1780_v25 = vpack.c.bf16 %v1197_v48, %v1197_v48  ;;  %v1195_v52 = vmul.f32 %v1990_v20, %v2422_v22  ;;  %2011 = vpow2.f32 %v1623_v56  ;;  %v2591_v54 = vpop.f32.mrb[21].mxu1  ;;  %v687_v22 = vmul.f32 %v2482_v37, %v2358_v34 }
 0x106   :  { %v2593_v29 = vpop.f32.mrb[22].mxu0  ;;  %v1994_v39 = vpop.eup %1993  ;;  %1486 = vst.msk [vmem:[%s3157_s4 + $0x18] sm:$0xf] %vm1479_vm2, %v1748_v12  ;;  %v1746_v40 = vpack.c.bf16 %v1163_v62, %v1163_v62  ;;  %v1166_v45 = vmul.f32 %v1992_v21, %v2425_v23  ;;  %2013 = vpow2.f32 %v1655_v1  ;;  %v2620_v60 = vadd.f32 %v2363_v36, %v684_v24 }
 0x107   :  { %v2602_v46 = vpop.f32.mrb[22].mxu1  ;;  %v2604_v30 = vpop.f32.mrb[23].mxu0  ;;  %1518 = vst.msk [vmem:[%s3157_s4 + $0x98] sm:$0xf] %vm1479_vm2, %v1780_v25  ;;  %v1778_v56 = vpack.c.bf16 %v1195_v52, %v1195_v52  ;;  %v1006_v57 = vadd.f32 1.0, %v1994_v39  ;;  %2015 = vpow2.f32 %v1628_v4  ;;  %v2627_v4 = vadd.f32 %v2363_v36, %v655_v18 }
 0x108   :  { %v1996_v51 = vpop.eup %1995  ;;  %v2613_v23 = vpop.f32.mrb[23].mxu1  ;;  %1484 = vst.msk [vmem:[%s3157_s4 + $0x10] sm:$0xf] %vm1479_vm2, %v1746_v40  ;;  %v1749_v37 = vpack.c.bf16 %v1166_v45, %v1166_v45  ;;  %2017 = vpow2.f32 %v1660_v7  ;;  %v653_v5 = vmul.f32 %v2358_v34, %v2484_v38  ;;  %v2636_v7 = vadd.f32 %v2363_v36, %v687_v22 }
 0x109   :  { %v1998_v63 = vpop.eup %1997  ;;  %v972_v1 = vadd.f32 1.0, %v1996_v51  ;;  %1516 = vst.msk [vmem:[%s3157_s4 + $0x90] sm:$0xf] %vm1479_vm2, %v1778_v56  ;;  %2019 = vrcp.f32 %v1006_v57  ;;  %v685_v11 = vmul.f32 %v2358_v34, %v2490_v43  ;;  %v2641_v13 = vmul.f32 -1.442695, %v2611_v58  ;;  %v2645_v20 = vpop.f32.mrb[24].mxu0 }
 0x10a   :  { %v2000_v26 = vpop.eup %1999  ;;  %v1004_v3 = vadd.f32 1.0, %v1998_v63  ;;  %1487 = vst.msk [vmem:[%s3157_s4 + $0x1c] sm:$0xf] %vm1479_vm2, %v1749_v37  ;;  %v658_v38 = vmul.f32 %v2504_v9, %v2358_v34  ;;  %v2648_v24 = vmul.f32 -1.442695, %v2620_v60  ;;  %v690_v43 = vmul.f32 %v2511_v15, %v2358_v34  ;;  %v2652_v21 = vpop.f32.mrb[24].mxu1 }
 0x10b   :  { %v2002_v61 = vpop.eup %2001  ;;  %2021 = vrcp.f32 %v972_v1  ;;  %v977_v33 = vadd.f32 1.0, %v2000_v26  ;;  %v2654_v25 = vpop.f32.mrb[25].mxu0  ;;  %v2657_v9 = vmul.f32 -1.442695, %v2627_v4  ;;  %v2660_v39 = vadd.f32 %v2363_v36, %v653_v5 }
 0x10c   :  { %v2004_v0 = vpop.eup %2003  ;;  %2023 = vrcp.f32 %v1004_v3  ;;  %v1009_v48 = vadd.f32 1.0, %v2002_v61  ;;  %v2662_v40 = vpop.f32.mrb[25].mxu1  ;;  %v2667_v51 = vmul.f32 -1.442695, %v2636_v7  ;;  %v2670_v56 = vadd.f32 %v2363_v36, %v685_v11 }
 0x10d   :  { %v2006_v12 = vpop.eup %2005  ;;  %2025 = vrcp.f32 %v977_v33  ;;  %v975_v62 = vadd.f32 1.0, %v2004_v0  ;;  %v2664_v45 = vpop.f32.mrb[26].mxu0  ;;  %v2675_v1 = vadd.f32 %v2363_v36, %v658_v38  ;;  %v656_v26 = vmul.f32 %v2358_v34, %v2513_v49 }
 0x10e   :  { %v2008_v52 = vpop.eup %2007  ;;  %2027 = vrcp.f32 %v1009_v48  ;;  %v1007_v18 = vadd.f32 1.0, %v2006_v12  ;;  %v2672_v57 = vpop.f32.mrb[26].mxu1  ;;  %v2684_v11 = vadd.f32 %v2363_v36, %v690_v43  ;;  %v688_v0 = vmul.f32 %v2358_v34, %v2519_v32 }
 0x10f   :  { %v2010_v22 = vpop.eup %2009  ;;  %2029 = vrcp.f32 %v975_v62  ;;  %v978_v15 = vadd.f32 1.0, %v2008_v52  ;;  %v2679_v3 = vpop.f32.mrb[27].mxu0  ;;  %v1627_v12 = vmul.f32 -1.442695, %v2660_v39  ;;  %v659_v49 = vmul.f32 %v2521_v50, %v2358_v34 }
 0x110   :  { %v2012_v63 = vpop.eup %2011  ;;  %2031 = vrcp.f32 %v1007_v18  ;;  %v1010_v37 = vadd.f32 1.0, %v2010_v22  ;;  %v2681_v5 = vpop.f32.mrb[27].mxu1  ;;  %v1659_v18 = vmul.f32 -1.442695, %v2670_v56  ;;  %v2693_v22 = vadd.f32 %v2363_v36, %v656_v26 }
 0x111   :  { %3158 = vst [vmem:[#allocation2_spill] sm:$0xff] %v2681_v5  ;;  %v2014_v61 = vpop.eup %2013  ;;  %2033 = vrcp.f32 %v978_v15  ;;  %v976_v33 = vadd.f32 1.0, %v2012_v63  ;;  %v1632_v32 = vmul.f32 -1.442695, %v2675_v1  ;;  %v691_v63 = vmul.f32 %v2532_v10, %v2358_v34  ;;  %v2705_v26 = vpop.f32.mrb[28].mxu1 }
 0x112   :  { %v2016_v48 = vpop.eup %2015  ;;  %2035 = vrcp.f32 %v1010_v37  ;;  %v1008_v38 = vadd.f32 1.0, %v2014_v61  ;;  %v2698_v37 = vpop.f32.mrb[28].mxu0  ;;  %3160 = vst [vmem:[#allocation4_spill] sm:$0xff] %v2705_v26  ;;  %v2711_v10 = vadd.f32 %v2363_v36, %v659_v49 }
 0x113   :  { %v2018_v62 = vpop.eup %2017  ;;  %2037 = vrcp.f32 %v976_v33  ;;  %v981_v52 = vadd.f32 1.0, %v2016_v48  ;;  %3159 = vst [vmem:[#allocation3_spill] sm:$0xff] %v2698_v37  ;;  %v1664_v33 = vmul.f32 -1.442695, %v2684_v11  ;;  %v2703_v48 = vadd.f32 %v2363_v36, %v688_v0 }
 0x114   :  { %v2020_v43 = vpop.eup %2019  ;;  %2039 = vrcp.f32 %v1008_v38  ;;  %v1013_v15 = vadd.f32 1.0, %v2018_v62  ;;  %v2707_v38 = vpop.f32.mrb[29].mxu0 }
 0x115   :  { %v2022_v61 = vpop.eup %2021  ;;  %v1198_v50 = vmul.f32 %v2020_v43, %v2432_v28  ;;  %2041 = vrcp.f32 %v981_v52  ;;  %3161 = vst [vmem:[#allocation5_spill] sm:$0xff] %v2707_v38  ;;  %v657_v28 = vmul.f32 %v2358_v34, %v2534_v42  ;;  %v2715_v52 = vpop.f32.mrb[29].mxu1  ;;  %v1630_v38 = vmul.f32 -1.442695, %v2693_v22 }
 0x116   :  { %v2024_v62 = vpop.eup %2023  ;;  %v1164_v5 = vmul.f32 %v2022_v61, %v2442_v53  ;;  %2043 = vrcp.f32 %v1013_v15  ;;  %v2717_v43 = vpop.f32.mrb[30].mxu0 }
 0x117   :  { %3162 = vst [vmem:[#allocation6_spill] sm:$0xff] %v2717_v43  ;;  %v2026_v0 = vpop.eup %2025  ;;  %v1781_v37 = vpack.c.bf16 %v1198_v50, %v1198_v50  ;;  %v1196_v26 = vmul.f32 %v2024_v62, %v2445_v59  ;;  %2045 = vpow2.f32 %v2641_v13  ;;  %v2722_v53 = vpop.f32.mrb[30].mxu1  ;;  %v2729_v43 = vadd.f32 %v2363_v36, %v691_v63 }
 0x118   :  { %v2724_v15 = vpop.f32.mrb[31].mxu0  ;;  %v2028_v49 = vpop.eup %2027  ;;  %v1747_v61 = vpack.c.bf16 %v1164_v5, %v1164_v5  ;;  %v1169_v42 = vmul.f32 %v2026_v0, %v2449_v2  ;;  %2047 = vpow2.f32 %v2648_v24  ;;  %v1662_v2 = vmul.f32 -1.442695, %v2703_v48 }
 0x119   :  { %v2731_v50 = vpop.f32.mrb[31].mxu1  ;;  %v2030_v59 = vpop.eup %2029  ;;  %1519 = vst.msk [vmem:[%s3157_s4 + $0x9c] sm:$0xf] %vm1479_vm2, %v1781_v37  ;;  %v1779_v13 = vpack.c.bf16 %v1196_v26, %v1196_v26  ;;  %v1201_v62 = vmul.f32 %v2028_v49, %v2453_v6  ;;  %2049 = vpow2.f32 %v2657_v9  ;;  %v2747_v37 = vadd.f32 %v2363_v36, %v657_v28 }
 0x11a   :  { %v2032_v5 = vpop.eup %2031  ;;  %1485 = vst.msk [vmem:[%s3157_s4 + $0x14] sm:$0xf] %vm1479_vm2, %v1747_v61  ;;  %v1752_v24 = vpack.c.bf16 %v1169_v42, %v1169_v42  ;;  %v1167_v63 = vmul.f32 %v2030_v59, %v2462_v19  ;;  %2051 = vpow2.f32 %v2667_v51  ;;  %v1633_v0 = vmul.f32 -1.442695, %v2711_v10 }
 0x11b   :  { %v2034_v26 = vpop.eup %2033  ;;  %1517 = vst.msk [vmem:[%s3157_s4 + $0x94] sm:$0xf] %vm1479_vm2, %v1779_v13  ;;  %v1784_v6 = vpack.c.bf16 %v1201_v62, %v1201_v62  ;;  %v1199_v9 = vmul.f32 %v2032_v5, %v2470_v27  ;;  %2053 = vpow2.f32 %v1627_v12  ;;  %v1665_v28 = vmul.f32 -1.442695, %v2729_v43 }
 0x11c   :  { %v2036_v49 = vpop.eup %2035  ;;  %1490 = vst.msk [vmem:[%s3157_s4 + $0x28] sm:$0xf] %vm1479_vm2, %v1752_v24  ;;  %v1750_v19 = vpack.c.bf16 %v1167_v63, %v1167_v63  ;;  %v1170_v51 = vmul.f32 %v2034_v26, %v2480_v35  ;;  %2055 = vpow2.f32 %v1659_v18  ;;  %v689_v42 = vmul.f32 %v2358_v34, %v2543_v16 }
 0x11d   :  { %v2038_v61 = vpop.eup %2037  ;;  %1522 = vst.msk [vmem:[%s3157_s4 + $0xa8] sm:$0xf] %vm1479_vm2, %v1784_v6  ;;  %v1782_v27 = vpack.c.bf16 %v1199_v9, %v1199_v9  ;;  %v1202_v12 = vmul.f32 %v2036_v49, %v2487_v41  ;;  %2057 = vpow2.f32 %v1632_v32  ;;  %v1631_v13 = vmul.f32 -1.442695, %v2747_v37 }
 0x11e   :  { %v2040_v59 = vpop.eup %2039  ;;  %1488 = vst.msk [vmem:[%s3157_s4 + $0x20] sm:$0xf] %vm1479_vm2, %v1750_v19  ;;  %v1753_v35 = vpack.c.bf16 %v1170_v51, %v1170_v51  ;;  %v1168_v18 = vmul.f32 %v2038_v61, %v2502_v8  ;;  %2059 = vpow2.f32 %v1664_v33  ;;  %v662_v32 = vmul.f32 %v2571_v44, %v2358_v34 }
 0x11f   :  { %v2042_v62 = vpop.eup %2041  ;;  %1520 = vst.msk [vmem:[%s3157_s4 + $0xa0] sm:$0xf] %vm1479_vm2, %v1782_v27  ;;  %v1785_v41 = vpack.c.bf16 %v1202_v12, %v1202_v12  ;;  %v1200_v16 = vmul.f32 %v2040_v59, %v2509_v14  ;;  %2061 = vpow2.f32 %v1630_v38  ;;  %v2792_v44 = vadd.f32 %v2363_v36, %v689_v42 }
 0x120   :  { %v2044_v5 = vpop.eup %2043  ;;  %1491 = vst.msk [vmem:[%s3157_s4 + $0x2c] sm:$0xf] %vm1479_vm2, %v1753_v35  ;;  %v1751_v8 = vpack.c.bf16 %v1168_v18, %v1168_v18  ;;  %v1173_v33 = vmul.f32 %v2042_v62, %v2517_v31  ;;  %2063 = vpow2.f32 %v1662_v2  ;;  %v694_v26 = vmul.f32 %v2580_v17, %v2358_v34 }
 0x121   :  { %v2046_v24 = vpop.eup %2045  ;;  %1523 = vst.msk [vmem:[%s3157_s4 + $0xac] sm:$0xf] %vm1479_vm2, %v1785_v41  ;;  %v1783_v14 = vpack.c.bf16 %v1200_v16, %v1200_v16  ;;  %v1205_v38 = vmul.f32 %v2044_v5, %v2530_v55  ;;  %2065 = vpow2.f32 %v1633_v0  ;;  %v2805_v0 = vadd.f32 %v2363_v36, %v662_v32 }
 0x122   :  { %v2048_v63 = vpop.eup %2047  ;;  %1489 = vst.msk [vmem:[%s3157_s4 + $0x24] sm:$0xf] %vm1479_vm2, %v1751_v8  ;;  %v1756_v31 = vpack.c.bf16 %v1173_v33, %v1173_v33  ;;  %v979_v2 = vadd.f32 1.0, %v2046_v24  ;;  %2067 = vpow2.f32 %v1665_v28  ;;  %v660_v19 = vmul.f32 %v2358_v34, %v2582_v47 }
 0x123   :  { %v2050_v6 = vpop.eup %2049  ;;  %1521 = vst.msk [vmem:[%s3157_s4 + $0xa4] sm:$0xf] %vm1479_vm2, %v1783_v14  ;;  %v1788_v55 = vpack.c.bf16 %v1205_v38, %v1205_v38  ;;  %v1011_v9 = vadd.f32 1.0, %v2048_v63  ;;  %2069 = vpow2.f32 %v1631_v13  ;;  %v692_v61 = vmul.f32 %v2358_v34, %v2591_v54 }
 0x124   :  { %v2052_v49 = vpop.eup %2051  ;;  %1494 = vst.msk [vmem:[%s3157_s4 + $0x38] sm:$0xf] %vm1479_vm2, %v1756_v31  ;;  %2071 = vrcp.f32 %v979_v2  ;;  %v982_v17 = vadd.f32 1.0, %v2050_v6  ;;  %v663_v27 = vmul.f32 %v2593_v29, %v2358_v34  ;;  %v1663_v59 = vmul.f32 -1.442695, %v2792_v44 }
 0x125   :  { %v2054_v51 = vpop.eup %2053  ;;  %1526 = vst.msk [vmem:[%s3157_s4 + $0xb8] sm:$0xf] %vm1479_vm2, %v1788_v55  ;;  %2073 = vrcp.f32 %v1011_v9  ;;  %v1014_v28 = vadd.f32 1.0, %v2052_v49  ;;  %v695_v47 = vmul.f32 %v2602_v46, %v2358_v34  ;;  %v1636_v13 = vmul.f32 -1.442695, %v2805_v0 }
 0x126   :  { %v2056_v12 = vpop.eup %2055  ;;  %2075 = vrcp.f32 %v982_v17  ;;  %v980_v42 = vadd.f32 1.0, %v2054_v51  ;;  %v2826_v62 = vadd.f32 %v2363_v36, %v694_v26  ;;  %v2829_v29 = vadd.f32 %v2363_v36, %v660_v19 }
 0x127   :  { %v2058_v35 = vpop.eup %2057  ;;  %2077 = vrcp.f32 %v1014_v28  ;;  %v1012_v18 = vadd.f32 1.0, %v2056_v12  ;;  %v661_v16 = vmul.f32 %v2358_v34, %v2604_v30  ;;  %v2834_v5 = vadd.f32 %v2363_v36, %v692_v61 }
 0x128   :  { %v2060_v54 = vpop.eup %2059  ;;  %2079 = vrcp.f32 %v980_v42  ;;  %v985_v41 = vadd.f32 1.0, %v2058_v35  ;;  %v2837_v8 = vadd.f32 %v2363_v36, %v663_v27  ;;  %v2840_v14 = vadd.f32 %v2363_v36, %v695_v47 }
 0x129   :  { %v2062_v32 = vpop.eup %2061  ;;  %2081 = vrcp.f32 %v1012_v18  ;;  %v1017_v46 = vadd.f32 1.0, %v2060_v54  ;;  %v693_v38 = vmul.f32 %v2358_v34, %v2613_v23  ;;  %v1668_v31 = vmul.f32 -1.442695, %v2826_v62 }
 0x12a   :  { %v2064_v33 = vpop.eup %2063  ;;  %2083 = vrcp.f32 %v985_v41  ;;  %v983_v24 = vadd.f32 1.0, %v2062_v32  ;;  %v2846_v2 = vadd.f32 %v2363_v36, %v661_v16  ;;  %v1634_v55 = vmul.f32 -1.442695, %v2829_v29 }
 0x12b   :  { %v2066_v63 = vpop.eup %2065  ;;  %2085 = vrcp.f32 %v1017_v46  ;;  %v1015_v30 = vadd.f32 1.0, %v2064_v33  ;;  %v666_v9 = vmul.f32 %v2645_v20, %v2358_v34  ;;  %v1666_v23 = vmul.f32 -1.442695, %v2834_v5 }
 0x12c   :  { %v2068_v26 = vpop.eup %2067  ;;  %2087 = vrcp.f32 %v983_v24  ;;  %v986_v6 = vadd.f32 1.0, %v2066_v63  ;;  %v1637_v19 = vmul.f32 -1.442695, %v2837_v8  ;;  %v1669_v61 = vmul.f32 -1.442695, %v2840_v14 }
 0x12d   :  { %v2070_v49 = vpop.eup %2069  ;;  %2089 = vrcp.f32 %v1015_v30  ;;  %v1018_v17 = vadd.f32 1.0, %v2068_v26  ;;  %v2855_v27 = vadd.f32 %v2363_v36, %v693_v38  ;;  %v1635_v20 = vmul.f32 -1.442695, %v2846_v2 }
 0x12e   :  { %v2072_v51 = vpop.eup %2071  ;;  %2091 = vrcp.f32 %v986_v6  ;;  %v984_v28 = vadd.f32 1.0, %v2070_v49  ;;  %v698_v47 = vmul.f32 %v2652_v21, %v2358_v34  ;;  %v2863_v54 = vadd.f32 %v2363_v36, %v666_v9 }
 0x12f   :  { %v2074_v12 = vpop.eup %2073  ;;  %v1171_v42 = vmul.f32 %v2072_v51, %v2611_v58  ;;  %2093 = vrcp.f32 %v1018_v17  ;;  %v664_v41 = vmul.f32 %v2358_v34, %v2654_v25  ;;  %v696_v46 = vmul.f32 %v2358_v34, %v2662_v40 }
 0x130   :  { %v2076_v35 = vpop.eup %2075  ;;  %v1203_v18 = vmul.f32 %v2074_v12, %v2620_v60  ;;  %2095 = vrcp.f32 %v984_v28  ;;  %v1667_v60 = vmul.f32 -1.442695, %v2855_v27 }
 0x131   :  { %v2078_v16 = vpop.eup %2077  ;;  %v1754_v32 = vpack.c.bf16 %v1171_v42, %v1171_v42  ;;  %v1174_v58 = vmul.f32 %v2076_v35, %v2627_v4  ;;  %2097 = vpow2.f32 %v1663_v59  ;;  %v2878_v59 = vadd.f32 %v2363_v36, %v698_v47  ;;  %v2933_v35 = vld [vmem:[%s3155_s2] ss:$0 sm:$0xff] }
 0x132   :  { %v2080_v33 = vpop.eup %2079  ;;  %v1786_v21 = vpack.c.bf16 %v1203_v18, %v1203_v18  ;;  %v1206_v24 = vmul.f32 %v2078_v16, %v2636_v7  ;;  %2099 = vpow2.f32 %v1636_v13  ;;  %v2886_v13 = vadd.f32 %v2363_v36, %v664_v41 }
 0x133   :  { %v2082_v38 = vpop.eup %2081  ;;  %1492 = vst.msk [vmem:[%s3157_s4 + $0x30] sm:$0xf] %vm1479_vm2, %v1754_v32  ;;  %v1757_v25 = vpack.c.bf16 %v1174_v58, %v1174_v58  ;;  %v1172_v4 = vmul.f32 %v2080_v33, %v2660_v39  ;;  %2101 = vpow2.f32 %v1668_v31  ;;  %v2894_v31 = vadd.f32 %v2363_v36, %v696_v46 }
 0x134   :  { %v2084_v34 = vpop.eup %2083  ;;  %1524 = vst.msk [vmem:[%s3157_s4 + $0xb0] sm:$0xf] %vm1479_vm2, %v1786_v21  ;;  %v1789_v7 = vpack.c.bf16 %v1206_v24, %v1206_v24  ;;  %v1204_v40 = vmul.f32 %v2082_v38, %v2670_v56  ;;  %2103 = vpow2.f32 %v1634_v55  ;;  %v1640_v55 = vmul.f32 -1.442695, %v2863_v54  ;;  %v3163_v21 = vld [vmem:[#allocation2_spill] sm:$0xff] }
 0x135   :  { %v2086_v63 = vpop.eup %2085  ;;  %1495 = vst.msk [vmem:[%s3157_s4 + $0x3c] sm:$0xf] %vm1479_vm2, %v1757_v25  ;;  %v1755_v39 = vpack.c.bf16 %v1172_v4, %v1172_v4  ;;  %v1177_v30 = vmul.f32 %v2084_v34, %v2675_v1  ;;  %2105 = vpow2.f32 %v1666_v23  ;;  %v1672_v49 = vmul.f32 -1.442695, %v2878_v59  ;;  %v3164_v4 = vld [vmem:[#allocation3_spill] sm:$0xff] }
 0x136   :  { %v2088_v26 = vpop.eup %2087  ;;  %1527 = vst.msk [vmem:[%s3157_s4 + $0xbc] sm:$0xf] %vm1479_vm2, %v1789_v7  ;;  %v1787_v56 = vpack.c.bf16 %v1204_v40, %v1204_v40  ;;  %v1209_v6 = vmul.f32 %v2086_v63, %v2684_v11  ;;  %2107 = vpow2.f32 %v1637_v19  ;;  %v1638_v19 = vmul.f32 -1.442695, %v2886_v13 }
 0x137   :  { %v2090_v9 = vpop.eup %2089  ;;  %1493 = vst.msk [vmem:[%s3157_s4 + $0x34] sm:$0xf] %vm1479_vm2, %v1755_v39  ;;  %v1760_v36 = vpack.c.bf16 %v1177_v30, %v1177_v30  ;;  %v1175_v1 = vmul.f32 %v2088_v26, %v2693_v22  ;;  %2109 = vpow2.f32 %v1669_v61  ;;  %v1670_v61 = vmul.f32 -1.442695, %v2894_v31  ;;  %v3165_v39 = vld [vmem:[#allocation4_spill] sm:$0xff] }
 0x138   :  { %v2092_v17 = vpop.eup %2091  ;;  %1525 = vst.msk [vmem:[%s3157_s4 + $0xb4] sm:$0xf] %vm1479_vm2, %v1787_v56  ;;  %v1792_v11 = vpack.c.bf16 %v1209_v6, %v1209_v6  ;;  %v1207_v23 = vmul.f32 %v2090_v9, %v2703_v48  ;;  %2111 = vpow2.f32 %v1635_v20  ;;  %v667_v18 = vmul.f32 %v2933_v35, %v2664_v45 }
 0x139   :  { %v2094_v51 = vpop.eup %2093  ;;  %1498 = vst.msk [vmem:[%s3157_s4 + $0x48] sm:$0xf] %vm1479_vm2, %v1760_v36  ;;  %v1758_v22 = vpack.c.bf16 %v1175_v1, %v1175_v1  ;;  %v1178_v28 = vmul.f32 %v2092_v17, %v2711_v10  ;;  %2113 = vpow2.f32 %v1667_v60  ;;  %v665_v46 = vmul.f32 %v2933_v35, %v2679_v3  ;;  %v2962_v3 = vld [vmem:[%s3156_s3] ss:$0 sm:$0xff] }
 0x13a   :  { %v2096_v12 = vpop.eup %2095  ;;  %1530 = vst.msk [vmem:[%s3157_s4 + $0xc8] sm:$0xf] %vm1479_vm2, %v1792_v11  ;;  %v1790_v48 = vpack.c.bf16 %v1207_v23, %v1207_v23  ;;  %v1210_v42 = vmul.f32 %v2094_v51, %v2729_v43  ;;  %2115 = vpow2.f32 %v1640_v55  ;;  %v697_v24 = vmul.f32 %v2933_v35, %v3163_v21  ;;  %v3166_v55 = vld [vmem:[#allocation5_spill] sm:$0xff] }
 0x13b   :  { %v2098_v20 = vpop.eup %2097  ;;  %1496 = vst.msk [vmem:[%s3157_s4 + $0x40] sm:$0xf] %vm1479_vm2, %v1758_v22  ;;  %v1761_v10 = vpack.c.bf16 %v1178_v28, %v1178_v28  ;;  %v1176_v47 = vmul.f32 %v2096_v12, %v2747_v37  ;;  %2117 = vpow2.f32 %v1672_v49  ;;  %v699_v37 = vmul.f32 %v2933_v35, %v2672_v57 }
 0x13c   :  { %v2100_v43 = vpop.eup %2099  ;;  %1528 = vst.msk [vmem:[%s3157_s4 + $0xc0] sm:$0xf] %vm1479_vm2, %v1790_v48  ;;  %v1793_v41 = vpack.c.bf16 %v1210_v42, %v1210_v42  ;;  %v1016_v16 = vadd.f32 1.0, %v2098_v20  ;;  %2119 = vpow2.f32 %v1638_v19  ;;  %v2965_v25 = vadd.f32 %v2962_v3, %v667_v18 }
 0x13d   :  { %v2102_v32 = vpop.eup %2101  ;;  %1499 = vst.msk [vmem:[%s3157_s4 + $0x4c] sm:$0xf] %vm1479_vm2, %v1761_v10  ;;  %v1759_v58 = vpack.c.bf16 %v1176_v47, %v1176_v47  ;;  %v989_v45 = vadd.f32 1.0, %v2100_v43  ;;  %2121 = vpow2.f32 %v1670_v61  ;;  %v670_v34 = vmul.f32 %v2933_v35, %v3164_v4 }
 0x13e   :  { %v2104_v33 = vpop.eup %2103  ;;  %1531 = vst.msk [vmem:[%s3157_s4 + $0xcc] sm:$0xf] %vm1479_vm2, %v1793_v41  ;;  %2123 = vrcp.f32 %v1016_v16  ;;  %v1021_v57 = vadd.f32 1.0, %v2102_v32  ;;  %v2970_v63 = vadd.f32 %v2962_v3, %v699_v37  ;;  %v702_v30 = vmul.f32 %v2933_v35, %v3165_v39  ;;  %v3167_v32 = vld [vmem:[#allocation6_spill] sm:$0xff] }
 0x13f   :  { %v2106_v60 = vpop.eup %2105  ;;  %1497 = vst.msk [vmem:[%s3157_s4 + $0x44] sm:$0xf] %vm1479_vm2, %v1759_v58  ;;  %2125 = vrcp.f32 %v989_v45  ;;  %v987_v38 = vadd.f32 1.0, %v2104_v33  ;;  %v2975_v6 = vadd.f32 %v2962_v3, %v665_v46  ;;  %v668_v9 = vmul.f32 %v2933_v35, %v3166_v55 }
 0x140   :  { %v2108_v7 = vpop.eup %2107  ;;  %2127 = vrcp.f32 %v1021_v57  ;;  %v1019_v40 = vadd.f32 1.0, %v2106_v60  ;;  %v2980_v49 = vadd.f32 %v2962_v3, %v697_v24  ;;  %v700_v17 = vmul.f32 %v2933_v35, %v2715_v52 }
 0x141   :  { %v2110_v26 = vpop.eup %2109  ;;  %2129 = vrcp.f32 %v987_v38  ;;  %v990_v56 = vadd.f32 1.0, %v2108_v7  ;;  %v1641_v19 = vmul.f32 -1.442695, %v2965_v25  ;;  %v2986_v51 = vadd.f32 %v2962_v3, %v670_v34 }
 0x142   :  { %v2112_v36 = vpop.eup %2111  ;;  %2131 = vrcp.f32 %v1019_v40  ;;  %v1022_v1 = vadd.f32 1.0, %v2110_v26  ;;  %v1673_v61 = vmul.f32 -1.442695, %v2970_v63  ;;  %v2990_v12 = vadd.f32 %v2962_v3, %v702_v30 }
 0x143   :  { %v2114_v11 = vpop.eup %2113  ;;  %2133 = vrcp.f32 %v990_v56  ;;  %v988_v23 = vadd.f32 1.0, %v2112_v36  ;;  %v1639_v52 = vmul.f32 -1.442695, %v2975_v6  ;;  %v2994_v20 = vadd.f32 %v2962_v3, %v668_v9 }
 0x144   :  { %v2116_v22 = vpop.eup %2115  ;;  %2135 = vrcp.f32 %v1022_v1  ;;  %v1020_v28 = vadd.f32 1.0, %v2114_v11  ;;  %v1671_v18 = vmul.f32 -1.442695, %v2980_v49  ;;  %v2998_v43 = vadd.f32 %v2962_v3, %v700_v17 }
 0x145   :  { %v2118_v48 = vpop.eup %2117  ;;  %2137 = vrcp.f32 %v988_v23  ;;  %v993_v42 = vadd.f32 1.0, %v2116_v22  ;;  %v1644_v37 = vmul.f32 -1.442695, %v2986_v51  ;;  %v671_v58 = vmul.f32 %v2933_v35, %v3167_v32 }
 0x146   :  { %v2120_v10 = vpop.eup %2119  ;;  %2139 = vrcp.f32 %v1020_v28  ;;  %v1025_v47 = vadd.f32 1.0, %v2118_v48  ;;  %v1676_v33 = vmul.f32 -1.442695, %v2990_v12  ;;  %v703_v57 = vmul.f32 %v2933_v35, %v2722_v53 }
 0x147   :  { %v2122_v41 = vpop.eup %2121  ;;  %2141 = vrcp.f32 %v993_v42  ;;  %v991_v16 = vadd.f32 1.0, %v2120_v10  ;;  %v1642_v60 = vmul.f32 -1.442695, %v2994_v20  ;;  %v669_v38 = vmul.f32 %v2933_v35, %v2724_v15 }
 0x148   :  { %v2124_v45 = vpop.eup %2123  ;;  %2143 = vrcp.f32 %v1025_v47  ;;  %v1023_v46 = vadd.f32 1.0, %v2122_v41  ;;  %v1674_v7 = vmul.f32 -1.442695, %v2998_v43  ;;  %v701_v40 = vmul.f32 %v2933_v35, %v2731_v50 }
 0x149   :  { %v2126_v21 = vpop.eup %2125  ;;  %v1208_v24 = vmul.f32 %v2124_v45, %v2792_v44  ;;  %2145 = vrcp.f32 %v991_v16  ;;  %v3016_v44 = vadd.f32 %v2962_v3, %v671_v58  ;;  %v3028_v35 = vadd.f32 %v2962_v3, %v669_v38 }
 0x14a   :  { %v2128_v4 = vpop.eup %2127  ;;  %v1181_v34 = vmul.f32 %v2126_v21, %v2805_v0  ;;  %2147 = vrcp.f32 %v1023_v46  ;;  %v3020_v0 = vadd.f32 %v2962_v3, %v703_v57  ;;  %v3036_v1 = vadd.f32 %v2962_v3, %v701_v40 }
 0x14b   :  { %v2130_v39 = vpop.eup %2129  ;;  %v1791_v53 = vpack.c.bf16 %v1208_v24, %v1208_v24  ;;  %v1213_v30 = vmul.f32 %v2128_v4, %v2826_v62  ;;  %2149 = vpow2.f32 %v1641_v19  ;;  %v1645_v23 = vmul.f32 -1.442695, %v3016_v44 }
 0x14c   :  { %v2132_v26 = vpop.eup %2131  ;;  %v1764_v56 = vpack.c.bf16 %v1181_v34, %v1181_v34  ;;  %v1179_v15 = vmul.f32 %v2130_v39, %v2829_v29  ;;  %2151 = vpow2.f32 %v1673_v61  ;;  %v1677_v22 = vmul.f32 -1.442695, %v3020_v0 }
 0x14d   :  { %v2134_v55 = vpop.eup %2133  ;;  %1529 = vst.msk [vmem:[%s3157_s4 + $0xc4] sm:$0xf] %vm1479_vm2, %v1791_v53  ;;  %v1796_v50 = vpack.c.bf16 %v1213_v30, %v1213_v30  ;;  %v1211_v62 = vmul.f32 %v2132_v26, %v2834_v5  ;;  %2153 = vpow2.f32 %v1639_v52  ;;  %v1643_v48 = vmul.f32 -1.442695, %v3028_v35 }
 0x14e   :  { %v2136_v9 = vpop.eup %2135  ;;  %1502 = vst.msk [vmem:[%s3157_s4 + $0x58] sm:$0xf] %vm1479_vm2, %v1764_v56  ;;  %v1762_v29 = vpack.c.bf16 %v1179_v15, %v1179_v15  ;;  %v1182_v36 = vmul.f32 %v2134_v55, %v2837_v8  ;;  %2155 = vpow2.f32 %v1671_v18  ;;  %v1675_v10 = vmul.f32 -1.442695, %v3036_v1 }
 0x14f   :  { %v2138_v17 = vpop.eup %2137  ;;  %1534 = vst.msk [vmem:[%s3157_s4 + $0xd8] sm:$0xf] %vm1479_vm2, %v1796_v50  ;;  %v1794_v5 = vpack.c.bf16 %v1211_v62, %v1211_v62  ;;  %v1214_v11 = vmul.f32 %v2136_v9, %v2840_v14  ;;  %2157 = vpow2.f32 %v1644_v37 }
 0x150   :  { %v2140_v19 = vpop.eup %2139  ;;  %1500 = vst.msk [vmem:[%s3157_s4 + $0x50] sm:$0xf] %vm1479_vm2, %v1762_v29  ;;  %v1765_v8 = vpack.c.bf16 %v1182_v36, %v1182_v36  ;;  %v1180_v3 = vmul.f32 %v2138_v17, %v2846_v2  ;;  %2159 = vpow2.f32 %v1676_v33 }
 0x151   :  { %v2142_v28 = vpop.eup %2141  ;;  %1532 = vst.msk [vmem:[%s3157_s4 + $0xd0] sm:$0xf] %vm1479_vm2, %v1794_v5  ;;  %v1797_v14 = vpack.c.bf16 %v1214_v11, %v1214_v11  ;;  %v1212_v61 = vmul.f32 %v2140_v19, %v2855_v27  ;;  %2161 = vpow2.f32 %v1642_v60 }
 0x152   :  { %v2144_v42 = vpop.eup %2143  ;;  %1503 = vst.msk [vmem:[%s3157_s4 + $0x5c] sm:$0xf] %vm1479_vm2, %v1765_v8  ;;  %v1763_v2 = vpack.c.bf16 %v1180_v3, %v1180_v3  ;;  %v1185_v52 = vmul.f32 %v2142_v28, %v2863_v54  ;;  %2163 = vpow2.f32 %v1674_v7 }
 0x153   :  { %v2146_v47 = vpop.eup %2145  ;;  %1535 = vst.msk [vmem:[%s3157_s4 + $0xdc] sm:$0xf] %vm1479_vm2, %v1797_v14  ;;  %v1795_v27 = vpack.c.bf16 %v1212_v61, %v1212_v61  ;;  %v1217_v18 = vmul.f32 %v2144_v42, %v2878_v59  ;;  %2165 = vpow2.f32 %v1645_v23 }
 0x154   :  { %v2148_v41 = vpop.eup %2147  ;;  %1501 = vst.msk [vmem:[%s3157_s4 + $0x54] sm:$0xf] %vm1479_vm2, %v1763_v2  ;;  %v1768_v54 = vpack.c.bf16 %v1185_v52, %v1185_v52  ;;  %v1183_v16 = vmul.f32 %v2146_v47, %v2886_v13  ;;  %2167 = vpow2.f32 %v1677_v22 }
 0x155   :  { %v2150_v37 = vpop.eup %2149  ;;  %1533 = vst.msk [vmem:[%s3157_s4 + $0xd4] sm:$0xf] %vm1479_vm2, %v1795_v27  ;;  %v1800_v32 = vpack.c.bf16 %v1217_v18, %v1217_v18  ;;  %v1215_v59 = vmul.f32 %v2148_v41, %v2894_v31  ;;  %2169 = vpow2.f32 %v1643_v48 }
 0x156   :  { %v2152_v58 = vpop.eup %2151  ;;  %1506 = vst.msk [vmem:[%s3157_s4 + $0x68] sm:$0xf] %vm1479_vm2, %v1768_v54  ;;  %v1766_v45 = vpack.c.bf16 %v1183_v16, %v1183_v16  ;;  %v994_v46 = vadd.f32 1.0, %v2150_v37  ;;  %2171 = vpow2.f32 %v1675_v10 }
 0x157   :  { %v2154_v13 = vpop.eup %2153  ;;  %1538 = vst.msk [vmem:[%s3157_s4 + $0xe8] sm:$0xf] %vm1479_vm2, %v1800_v32  ;;  %v1798_v33 = vpack.c.bf16 %v1215_v59, %v1215_v59  ;;  %v1026_v57 = vadd.f32 1.0, %v2152_v58 }
 0x158   :  { %v2156_v21 = vpop.eup %2155  ;;  %1504 = vst.msk [vmem:[%s3157_s4 + $0x60] sm:$0xf] %vm1479_vm2, %v1766_v45  ;;  %2173 = vrcp.f32 %v994_v46  ;;  %v992_v31 = vadd.f32 1.0, %v2154_v13 }
 0x159   :  { %v2158_v24 = vpop.eup %2157  ;;  %1536 = vst.msk [vmem:[%s3157_s4 + $0xe0] sm:$0xf] %vm1479_vm2, %v1798_v33  ;;  %2175 = vrcp.f32 %v1026_v57  ;;  %v1024_v60 = vadd.f32 1.0, %v2156_v21 }
 0x15a   :  { %v2160_v38 = vpop.eup %2159  ;;  %2177 = vrcp.f32 %v992_v31  ;;  %v997_v4 = vadd.f32 1.0, %v2158_v24 }
 0x15b   :  { %v2162_v34 = vpop.eup %2161  ;;  %2179 = vrcp.f32 %v1024_v60  ;;  %v1029_v7 = vadd.f32 1.0, %v2160_v38 }
 0x15c   :  { %v2164_v40 = vpop.eup %2163  ;;  %2181 = vrcp.f32 %v997_v4  ;;  %v995_v39 = vadd.f32 1.0, %v2162_v34 }
 0x15d   :  { %v2166_v53 = vpop.eup %2165  ;;  %2183 = vrcp.f32 %v1029_v7  ;;  %v1027_v30 = vadd.f32 1.0, %v2164_v40 }
 0x15e   :  { %v2168_v26 = vpop.eup %2167  ;;  %2185 = vrcp.f32 %v995_v39  ;;  %v998_v56 = vadd.f32 1.0, %v2166_v53 }
 0x15f   :  { %v2170_v15 = vpop.eup %2169  ;;  %2187 = vrcp.f32 %v1027_v30  ;;  %v1030_v55 = vadd.f32 1.0, %v2168_v26 }
 0x160   :  { %v2172_v50 = vpop.eup %2171  ;;  %2189 = vrcp.f32 %v998_v56  ;;  %v996_v62 = vadd.f32 1.0, %v2170_v15 }
 0x161   :  { %2191 = vrcp.f32 %v1030_v55  ;;  %v1028_v9 = vadd.f32 1.0, %v2172_v50 }
 0x162   :  { %v2174_v29 = vpop.eup %2173  ;;  %2193 = vrcp.f32 %v996_v62 }
 0x163   :  { %v2176_v36 = vpop.eup %2175  ;;  %v1186_v17 = vmul.f32 %v2174_v29, %v2965_v25  ;;  %2195 = vrcp.f32 %v1028_v9 }
 0x164   :  { %v2178_v5 = vpop.eup %2177  ;;  %v1218_v11 = vmul.f32 %v2176_v36, %v2970_v63 }
 0x165   :  { %v2180_v23 = vpop.eup %2179  ;;  %v1769_v19 = vpack.c.bf16 %v1186_v17, %v1186_v17  ;;  %v1184_v8 = vmul.f32 %v2178_v5, %v2975_v6 }
 0x166   :  { %v2182_v3 = vpop.eup %2181  ;;  %v1801_v22 = vpack.c.bf16 %v1218_v11, %v1218_v11  ;;  %v1216_v28 = vmul.f32 %v2180_v23, %v2980_v49 }
 0x167   :  { %v2184_v14 = vpop.eup %2183  ;;  %1507 = vst.msk [vmem:[%s3157_s4 + $0x6c] sm:$0xf] %vm1479_vm2, %v1769_v19  ;;  %v1767_v61 = vpack.c.bf16 %v1184_v8, %v1184_v8  ;;  %v1189_v25 = vmul.f32 %v2182_v3, %v2986_v51 }
 0x168   :  { %v2186_v48 = vpop.eup %2185  ;;  %1539 = vst.msk [vmem:[%s3157_s4 + $0xec] sm:$0xf] %vm1479_vm2, %v1801_v22  ;;  %v1799_v63 = vpack.c.bf16 %v1216_v28, %v1216_v28  ;;  %v1221_v6 = vmul.f32 %v2184_v14, %v2990_v12 }
 0x169   :  { %v2188_v42 = vpop.eup %2187  ;;  %1505 = vst.msk [vmem:[%s3157_s4 + $0x64] sm:$0xf] %vm1479_vm2, %v1767_v61  ;;  %v1772_v49 = vpack.c.bf16 %v1189_v25, %v1189_v25  ;;  %v1187_v2 = vmul.f32 %v2186_v48, %v2994_v20 }
 0x16a   :  { %v2190_v52 = vpop.eup %2189  ;;  %1537 = vst.msk [vmem:[%s3157_s4 + $0xe4] sm:$0xf] %vm1479_vm2, %v1799_v63  ;;  %v1804_v51 = vpack.c.bf16 %v1221_v6, %v1221_v6  ;;  %v1219_v10 = vmul.f32 %v2188_v42, %v2998_v43 }
 0x16b   :  { %v2192_v47 = vpop.eup %2191  ;;  %1510 = vst.msk [vmem:[%s3157_s4 + $0x78] sm:$0xf] %vm1479_vm2, %v1772_v49  ;;  %v1770_v12 = vpack.c.bf16 %v1187_v2, %v1187_v2  ;;  %v1190_v27 = vmul.f32 %v2190_v52, %v3016_v44 }
 0x16c   :  { %v2194_v18 = vpop.eup %2193  ;;  %1542 = vst.msk [vmem:[%s3157_s4 + $0xf8] sm:$0xf] %vm1479_vm2, %v1804_v51  ;;  %v1802_v20 = vpack.c.bf16 %v1219_v10, %v1219_v10  ;;  %v1222_v41 = vmul.f32 %v2192_v47, %v3020_v0 }
 0x16d   :  { %v2196_v54 = vpop.eup %2195  ;;  %1508 = vst.msk [vmem:[%s3157_s4 + $0x70] sm:$0xf] %vm1479_vm2, %v1770_v12  ;;  %v1773_v43 = vpack.c.bf16 %v1190_v27, %v1190_v27  ;;  %v1188_v16 = vmul.f32 %v2194_v18, %v3028_v35 }
 0x16e   :  { %1540 = vst.msk [vmem:[%s3157_s4 + $0xf0] sm:$0xf] %vm1479_vm2, %v1802_v20  ;;  %v1805_v44 = vpack.c.bf16 %v1222_v41, %v1222_v41  ;;  %v1220_v37 = vmul.f32 %v2196_v54, %v3036_v1 }
 0x16f   :  { %1511 = vst.msk [vmem:[%s3157_s4 + $0x7c] sm:$0xf] %vm1479_vm2, %v1773_v43  ;;  %v1771_v0 = vpack.c.bf16 %v1188_v16, %v1188_v16 }
 0x170   :  { %1543 = vst.msk [vmem:[%s3157_s4 + $0xfc] sm:$0xf] %vm1479_vm2, %v1805_v44  ;;  %v1803_v35 = vpack.c.bf16 %v1220_v37, %v1220_v37 }
 0x171   :  { %1509 = vst.msk [vmem:[%s3157_s4 + $0x74] sm:$0xf] %vm1479_vm2, %v1771_v0 }
 0x172   :  { %1541 = vst.msk [vmem:[%s3157_s4 + $0xf4] sm:$0xf] %vm1479_vm2, %v1803_v35 }

</bundles_post_ra>
